<compile_context>
chip_gen: v7x
topology: tpu7x:2x2x1
jax: 0.10.0
libtpu: 0.0.40
codegen_flags: <defaults>
</compile_context>

<pallas_src>
import functools

import jax
import jax.numpy as jnp
import numpy as np
from jax.experimental import pallas as pl
from jax.experimental.pallas import tpu as pltpu

EPS = 1e-5                    # nn.BatchNorm2d default eps
TILE_M = 256                  # matmul row tile (VMEM-safe on v7x's 32 MiB scoped)
VMEM_LIMIT = 32 * 1024 * 1024


def _round_up(x, m):
    return (x + m - 1) // m * m


def _pad_to(a, rows, cols):
    return jnp.pad(a, ((0, rows - a.shape[0]), (0, cols - a.shape[1])))


def _pad_vec(v, n):
    return jnp.pad(v, (0, n - v.shape[0]))


def _stream_tile(m_pad):
    """Largest streaming row tile (<= 2048) that divides m_pad (mult of 256)."""
    for t in (2048, 1024, 512, 256):
        if m_pad % t == 0:
            return t
    return m_pad


# ---------------------------------------------------------------------------
# Pallas kernels
# ---------------------------------------------------------------------------
def conv_bn_stats_kernel(a_ref, w_ref, o_ref, stats_ref):
    """bf16 matmul, f32 accumulate; emits bf16 conv tile + per-tile BN partials.

    stats block (8, tn): row 0 = sum over rows of the f32 acc tile,
    row 1 = sum of squares, rows 2..7 = 0.
    """
    acc = jnp.dot(a_ref[...], w_ref[...], preferred_element_type=jnp.float32)
    o_ref[...] = acc.astype(o_ref.dtype)
    stats_ref[0:1, :] = jnp.sum(acc, axis=0, keepdims=True)
    stats_ref[1:2, :] = jnp.sum(acc * acc, axis=0, keepdims=True)
    stats_ref[2:8, :] = jnp.zeros((6, acc.shape[1]), jnp.float32)


def scale_bias_relu_kernel(h_ref, s_ref, b_ref, o_ref):
    h = h_ref[...].astype(jnp.float32) * s_ref[...] + b_ref[...]
    o_ref[...] = jnp.maximum(h, 0.0).astype(o_ref.dtype)


def scale_bias_add_relu_kernel(h_ref, sc_ref, s_ref, b_ref, o_ref):
    h = h_ref[...].astype(jnp.float32) * s_ref[...] + b_ref[...]
    o_ref[...] = jnp.maximum(h + sc_ref[...].astype(jnp.float32),
                             0.0).astype(o_ref.dtype)


def scale_bias2_add_relu_kernel(h_ref, hs_ref, s_ref, b_ref, ss_ref, bs_ref,
                                o_ref):
    h = h_ref[...].astype(jnp.float32) * s_ref[...] + b_ref[...]
    s = hs_ref[...].astype(jnp.float32) * ss_ref[...] + bs_ref[...]
    o_ref[...] = jnp.maximum(h + s, 0.0).astype(o_ref.dtype)


# ---------------------------------------------------------------------------
# pallas_call wrappers
# ---------------------------------------------------------------------------
def conv_matmul_stats(a, w):
    """a: [M_pad, K_pad] bf16, w: [K_pad, N_pad] bf16 ->
       (conv [M_pad, N_pad] bf16, stats partials [nm*8, N_pad] f32).

    Grid = (N tiles, M tiles); weight slice is constant over the inner M axis
    (VMEM-resident, no re-DMA); no K reduction axis; both axes "parallel".
    """
    M, K = a.shape
    K2, N = w.shape
    assert K == K2
    tm = TILE_M
    tn = 256 if N % 256 == 0 else 128
    nm, nn = M // tm, N // tn
    return pl.pallas_call(
        conv_bn_stats_kernel,
        out_shape=(jax.ShapeDtypeStruct((M, N), jnp.bfloat16),
                   jax.ShapeDtypeStruct((nm * 8, N), jnp.float32)),
        grid_spec=pltpu.PrefetchScalarGridSpec(
            num_scalar_prefetch=0,
            grid=(nn, nm),
            in_specs=[pl.BlockSpec((tm, K), lambda j, i: (i, 0)),
                      pl.BlockSpec((K, tn), lambda j, i: (0, j))],
            out_specs=(pl.BlockSpec((tm, tn), lambda j, i: (i, j)),
                       pl.BlockSpec((8, tn), lambda j, i: (i, j)))),
        compiler_params=pltpu.CompilerParams(
            dimension_semantics=("parallel", "parallel"),
            vmem_limit_bytes=VMEM_LIMIT),
    )(a, w)


def fused_epilogue(kernel, row_args, vec_args, out_dtype):
    """Row-tiled streaming epilogue: h*scale + bias (+add)(+ReLU)."""
    M, N = row_args[0].shape
    tm = _stream_tile(M)
    in_specs = ([pl.BlockSpec((tm, N), lambda i: (i, 0)) for _ in row_args] +
                [pl.BlockSpec((1, N), lambda i: (0, 0)) for _ in vec_args])
    return pl.pallas_call(
        kernel,
        out_shape=jax.ShapeDtypeStruct((M, N), out_dtype),
        grid_spec=pltpu.PrefetchScalarGridSpec(
            num_scalar_prefetch=0,
            grid=(M // tm,),
            in_specs=in_specs,
            out_specs=pl.BlockSpec((tm, N), lambda i: (i, 0))),
        compiler_params=pltpu.CompilerParams(
            dimension_semantics=("parallel",),
            vmem_limit_bytes=VMEM_LIMIT),
    )(*row_args, *vec_args)


# ---------------------------------------------------------------------------
# JAX glue: im2col / weight reshaping / BN finalize (tiny, per-channel)
# ---------------------------------------------------------------------------
def im2col(x_nhwc, ksize, stride, pad):
    n, h, w, c = x_nhwc.shape
    xp = jnp.pad(x_nhwc, ((0, 0), (pad, pad), (pad, pad), (0, 0)))
    ho = (h + 2 * pad - ksize) // stride + 1
    wo = (w + 2 * pad - ksize) // stride + 1
    cols = []
    for dy in range(ksize):
        for dx in range(ksize):
            cols.append(xp[:, dy:dy + ho * stride:stride,
                           dx:dx + wo * stride:stride, :])
    a = jnp.concatenate(cols, axis=-1)          # [N, Ho, Wo, K*K*C]
    return a.reshape(n * ho * wo, ksize * ksize * c), ho, wo


def conv_weight_to_matrix(w_oihw):
    # [Cout, Cin, kh, kw] -> [(dy, dx, cin), Cout], matching im2col column order
    co, ci, kh, kw = w_oihw.shape
    return jnp.transpose(w_oihw, (2, 3, 1, 0)).reshape(kh * kw * ci, co)


def bn_scale_bias(stats_partials, gamma, beta, count):
    """Combine per-M-tile partials and fold BN into (scale, bias) once."""
    s = stats_partials.reshape(-1, 8, stats_partials.shape[-1])
    total = jnp.sum(s[:, 0, :], axis=0)
    total_sq = jnp.sum(s[:, 1, :], axis=0)
    mean = total / count
    var = jnp.maximum(total_sq / count - mean * mean, 0.0)    # biased variance
    scale = gamma * jax.lax.rsqrt(var + EPS)
    bias = beta - mean * scale
    return scale.reshape(1, -1), bias.reshape(1, -1)


@functools.partial(jax.jit, static_argnames=("stride",))
def basic_block_forward(x_nchw, params, stride):
    x = jnp.transpose(x_nchw, (0, 2, 3, 1)).astype(jnp.float32)   # NCHW -> NHWC
    n, h, w, cin = x.shape
    planes = params["conv1_w"].shape[0]
    x_bf = x.astype(jnp.bfloat16)

    n_pad = _round_up(planes, 128)       # lane-dense C_out

    # ---- conv1 (+ fused bn1 stats) -> bn1+relu ----
    a1, h1, w1 = im2col(x_bf, 3, stride, 1)
    rows = n * h1 * w1
    m_pad = _round_up(rows, TILE_M)      # zero-padded rows contribute 0 to sums

    k1_pad = _round_up(a1.shape[1], 128)
    a1p = _pad_to(a1, m_pad, k1_pad)
    w1p = _pad_to(conv_weight_to_matrix(params["conv1_w"]).astype(jnp.bfloat16),
                  k1_pad, n_pad)
    conv1, st1 = conv_matmul_stats(a1p, w1p)             # bf16, f32 partials
    s1, b1 = bn_scale_bias(st1, _pad_vec(params["bn1_gamma"], n_pad),
                           _pad_vec(params["bn1_beta"], n_pad), rows)
    out1 = fused_epilogue(scale_bias_relu_kernel, [conv1], [s1, b1],
                          jnp.bfloat16)

    # ---- conv2 (+ fused bn2 stats) ----
    out1_nhwc = out1[:rows, :planes].reshape(n, h1, w1, planes)
    a2, _, _ = im2col(out1_nhwc, 3, 1, 1)
    k2_pad = _round_up(a2.shape[1], 128)
    a2p = _pad_to(a2, m_pad, k2_pad)
    w2p = _pad_to(conv_weight_to_matrix(params["conv2_w"]).astype(jnp.bfloat16),
                  k2_pad, n_pad)
    conv2, st2 = conv_matmul_stats(a2p, w2p)
    s2, b2 = bn_scale_bias(st2, _pad_vec(params["bn2_gamma"], n_pad),
                           _pad_vec(params["bn2_beta"], n_pad), rows)

    use_proj = (stride != 1) or (cin != planes)
    if use_proj:
        # 1x1 strided shortcut conv as its own small matmul (+ fused stats)
        asc, _, _ = im2col(x_bf, 1, stride, 0)
        ksc_pad = _round_up(asc.shape[1], 128)
        ascp = _pad_to(asc, m_pad, ksc_pad)
        wscp = _pad_to(
            conv_weight_to_matrix(params["sc_w"]).astype(jnp.bfloat16),
            ksc_pad, n_pad)
        convsc, stsc = conv_matmul_stats(ascp, wscp)
        ssc, bsc = bn_scale_bias(stsc, _pad_vec(params["sc_gamma"], n_pad),
                                 _pad_vec(params["sc_beta"], n_pad), rows)
        out = fused_epilogue(scale_bias2_add_relu_kernel,
                             [conv2, convsc], [s2, b2, ssc, bsc], jnp.float32)
    else:
        # identity shortcut streamed as bf16, upcast in-kernel
        sc = _pad_to(x_bf.reshape(rows, cin), m_pad, n_pad)
        out = fused_epilogue(scale_bias_add_relu_kernel,
                             [conv2, sc], [s2, b2], jnp.float32)

    out_nhwc = out[:rows, :planes].reshape(n, h1, w1, planes)
    return jnp.transpose(out_nhwc, (0, 3, 1, 2))              # NHWC -> NCHW


# ---------------------------------------------------------------------------
# Pure-JAX reference for correctness checking
# ---------------------------------------------------------------------------
def _conv_ref(x_nhwc, w_oihw, stride, pad):
    w_hwio = jnp.transpose(w_oihw, (2, 3, 1, 0))
    return jax.lax.conv_general_dilated(
        x_nhwc, w_hwio, (stride, stride), ((pad, pad), (pad, pad)),
        dimension_numbers=("NHWC", "HWIO", "NHWC"))


def _bn_ref(x_nhwc, gamma, beta):
    mean = jnp.mean(x_nhwc, axis=(0, 1, 2), keepdims=True)
    var = jnp.mean((x_nhwc - mean) ** 2, axis=(0, 1, 2), keepdims=True)
    return (x_nhwc - mean) * jax.lax.rsqrt(var + EPS) * gamma + beta


def basic_block_ref(x_nchw, params, stride):
    x = jnp.transpose(x_nchw, (0, 2, 3, 1)).astype(jnp.float32)
    cin = x.shape[-1]
    planes = params["conv1_w"].shape[0]
    out = jax.nn.relu(_bn_ref(_conv_ref(x, params["conv1_w"], stride, 1),
                              params["bn1_gamma"], params["bn1_beta"]))
    out = _bn_ref(_conv_ref(out, params["conv2_w"], 1, 1),
                  params["bn2_gamma"], params["bn2_beta"])
    if stride != 1 or cin != planes:
        sc = _bn_ref(_conv_ref(x, params["sc_w"], stride, 0),
                     params["sc_gamma"], params["sc_beta"])
    else:
        sc = x
    out = jax.nn.relu(out + sc)
    return jnp.transpose(out, (0, 3, 1, 2))


# ---------------------------------------------------------------------------
# Deterministic parameter init (shapes as in BasicBlock.__init__)
# ---------------------------------------------------------------------------
def init_params(key, in_planes, planes, stride):
    k1, k2, k3 = jax.random.split(key, 3)
    params = {
        "conv1_w": 0.1 * jax.random.normal(k1, (planes, in_planes, 3, 3), jnp.float32),
        "bn1_gamma": jnp.ones((planes,), jnp.float32),
        "bn1_beta": jnp.zeros((planes,), jnp.float32),
        "conv2_w": 0.1 * jax.random.normal(k2, (planes, planes, 3, 3), jnp.float32),
        "bn2_gamma": jnp.ones((planes,), jnp.float32),
        "bn2_beta": jnp.zeros((planes,), jnp.float32),
    }
    if stride != 1 or in_planes != planes:
        params["sc_w"] = 0.1 * jax.random.normal(k3, (planes, in_planes, 1, 1), jnp.float32)
        params["sc_gamma"] = jnp.ones((planes,), jnp.float32)
        params["sc_beta"] = jnp.zeros((planes,), jnp.float32)
    return params


if __name__ == "__main__":
    key = jax.random.PRNGKey(0)
    kx1, kp1, kx2, kp2 = jax.random.split(key, 4)

    # bf16 MXU inputs / bf16 conv outputs with f32 statistics -> relaxed tol.
    RTOL = ATOL = 5e-2

    # Case A: downsampling block with 1x1-conv shortcut (stride=2, 4 -> 8 channels)
    x_a = jax.random.normal(kx1, (2, 4, 16, 16), jnp.float32)       # NCHW
    p_a = init_params(kp1, in_planes=4, planes=8, stride=2)
    out_a = jax.block_until_ready(basic_block_forward(x_a, p_a, stride=2))
    ref_a = jax.block_until_ready(basic_block_ref(x_a, p_a, stride=2))
    assert out_a.shape == (2, 8, 8, 8)
    np.testing.assert_allclose(np.asarray(out_a), np.asarray(ref_a),
                               rtol=RTOL, atol=ATOL)

    # Case B: identity-shortcut block (stride=1, 8 -> 8 channels)
    x_b = jax.random.normal(kx2, (2, 8, 16, 16), jnp.float32)       # NCHW
    p_b = init_params(kp2, in_planes=8, planes=8, stride=1)
    out_b = jax.block_until_ready(basic_block_forward(x_b, p_b, stride=1))
    ref_b = jax.block_until_ready(basic_block_ref(x_b, p_b, stride=1))
    assert out_b.shape == (2, 8, 16, 16)
    np.testing.assert_allclose(np.asarray(out_b), np.asarray(ref_b),
                               rtol=RTOL, atol=ATOL)

    print("KERNEL_OK")
</pallas_src>

<mosaic_0001>
module attributes {stable_mosaic.version = 11 : i64} {
  func.func @conv_bn_stats_kernel(%arg0: i32, %arg1: i32, %arg2: memref<256x128xbf16, #tpu.memory_space<vmem>>, %arg3: memref<128x128xbf16, #tpu.memory_space<vmem>>, %arg4: memref<256x128xbf16, #tpu.memory_space<vmem>>, %arg5: memref<8x128xf32, #tpu.memory_space<vmem>>) attributes {dimension_semantics = [#tpu.dimension_semantics<parallel>, #tpu.dimension_semantics<parallel>], iteration_bounds = array<i64: 1, 1>, scalar_prefetch = 0 : i64, scratch_operands = 0 : i64, tpu.core_type = #tpu.core_type<tc>, window_params = [{transform_indices = @transform_0, window_bounds = array<i64: 256, 128>}, {transform_indices = @transform_1, window_bounds = array<i64: 128, 128>}, {transform_indices = @transform_2, window_bounds = array<i64: 256, 128>}, {transform_indices = @transform_3, window_bounds = array<i64: 8, 128>}]} {
    %c0 = arith.constant 0 : index
    %c0_0 = arith.constant 0 : index
    %0 = vector.load %arg2[%c0, %c0_0] : memref<256x128xbf16, #tpu.memory_space<vmem>>, vector<256x128xbf16>
    %c0_1 = arith.constant 0 : index
    %c0_2 = arith.constant 0 : index
    %1 = vector.load %arg3[%c0_1, %c0_2] : memref<128x128xbf16, #tpu.memory_space<vmem>>, vector<128x128xbf16>
    %cst = arith.constant dense<0.000000e+00> : vector<256x128xf32>
    %2 = tpu.matmul %0, %1, %cst {dimension_numbers = #tpu.dot_dimension_numbers<[1], [0], [0], [1], [0, 0, 1, 1], [], []>} : vector<256x128xbf16>, vector<128x128xbf16>, vector<256x128xf32> -> vector<256x128xf32>
    %3 = arith.truncf %2 : vector<256x128xf32> to vector<256x128xbf16>
    %c0_3 = arith.constant 0 : index
    %c0_4 = arith.constant 0 : index
    %4 = vector.load %arg4[%c0_3, %c0_4] : memref<256x128xbf16, #tpu.memory_space<vmem>>, vector<256x128xbf16>
    tpu.vector_store %arg4[%c0_3, %c0_4], %3 {strides = array<i32>} : memref<256x128xbf16, #tpu.memory_space<vmem>>, vector<256x128xbf16>,
    %cst_5 = arith.constant dense<0.000000e+00> : vector<128xf32>
    %5 = vector.multi_reduction <add>, %2, %cst_5 [0] : vector<256x128xf32> to vector<128xf32>
    %6 = vector.shape_cast %5 : vector<128xf32> to vector<1x128xf32>
    %c0_6 = arith.constant 0 : index
    %c0_7 = arith.constant 0 : index
    %7 = vector.load %arg5[%c0_6, %c0_7] : memref<8x128xf32, #tpu.memory_space<vmem>>, vector<1x128xf32>
    tpu.vector_store %arg5[%c0_6, %c0_7], %6 {strides = array<i32>} : memref<8x128xf32, #tpu.memory_space<vmem>>, vector<1x128xf32>,
    %8 = arith.mulf %2, %2 : vector<256x128xf32>
    %cst_8 = arith.constant dense<0.000000e+00> : vector<128xf32>
    %9 = vector.multi_reduction <add>, %8, %cst_8 [0] : vector<256x128xf32> to vector<128xf32>
    %10 = vector.shape_cast %9 : vector<128xf32> to vector<1x128xf32>
    %c1 = arith.constant 1 : index
    %c0_9 = arith.constant 0 : index
    %11 = vector.load %arg5[%c1, %c0_9] : memref<8x128xf32, #tpu.memory_space<vmem>>, vector<1x128xf32>
    tpu.vector_store %arg5[%c1, %c0_9], %10 {strides = array<i32>} : memref<8x128xf32, #tpu.memory_space<vmem>>, vector<1x128xf32>,
    %cst_10 = arith.constant 0.000000e+00 : f32
    %12 = vector.broadcast %cst_10 : f32 to vector<6x128xf32>
    %c2 = arith.constant 2 : index
    %c0_11 = arith.constant 0 : index
    %13 = vector.load %arg5[%c2, %c0_11] : memref<8x128xf32, #tpu.memory_space<vmem>>, vector<6x128xf32>
    tpu.vector_store %arg5[%c2, %c0_11], %12 {strides = array<i32>} : memref<8x128xf32, #tpu.memory_space<vmem>>, vector<6x128xf32>,
    return
  }
  func.func @transform_0(%arg0: i32, %arg1: i32) -> (i32, i32) {
    %c0_i32 = arith.constant 0 : i32
    %c0_i32_0 = arith.constant 0 : i32
    return %arg1, %c0_i32 : i32, i32
  }
  func.func @transform_1(%arg0: i32, %arg1: i32) -> (i32, i32) {
    %c0_i32 = arith.constant 0 : i32
    %c0_i32_0 = arith.constant 0 : i32
    return %c0_i32, %arg0 : i32, i32
  }
  func.func @transform_2(%arg0: i32, %arg1: i32) -> (i32, i32) {
    %c0_i32 = arith.constant 0 : i32
    return %arg1, %arg0 : i32, i32
  }
  func.func @transform_3(%arg0: i32, %arg1: i32) -> (i32, i32) {
    %c0_i32 = arith.constant 0 : i32
    return %arg1, %arg0 : i32, i32
  }
}

module attributes {stable_mosaic.version = 11 : i64} {
  func.func @scale_bias_relu_kernel(%arg0: i32, %arg1: memref<256x128xbf16, #tpu.memory_space<vmem>>, %arg2: memref<1x128xf32, #tpu.memory_space<vmem>>, %arg3: memref<1x128xf32, #tpu.memory_space<vmem>>, %arg4: memref<256x128xbf16, #tpu.memory_space<vmem>>) attributes {dimension_semantics = [#tpu.dimension_semantics<parallel>], iteration_bounds = array<i64: 1>, scalar_prefetch = 0 : i64, scratch_operands = 0 : i64, tpu.core_type = #tpu.core_type<tc>, window_params = [{transform_indices = @transform_0, window_bounds = array<i64: 256, 128>}, {pipeline_mode = #tpu.pipeline_mode<synchronous>, transform_indices = @transform_1, window_bounds = array<i64: 1, 128>}, {pipeline_mode = #tpu.pipeline_mode<synchronous>, transform_indices = @transform_2, window_bounds = array<i64: 1, 128>}, {transform_indices = @transform_3, window_bounds = array<i64: 256, 128>}]} {
    %c0 = arith.constant 0 : index
    %c0_0 = arith.constant 0 : index
    %0 = vector.load %arg1[%c0, %c0_0] : memref<256x128xbf16, #tpu.memory_space<vmem>>, vector<256x128xbf16>
    %1 = arith.extf %0 : vector<256x128xbf16> to vector<256x128xf32>
    %c0_1 = arith.constant 0 : index
    %c0_2 = arith.constant 0 : index
    %2 = vector.load %arg2[%c0_1, %c0_2] : memref<1x128xf32, #tpu.memory_space<vmem>>, vector<1x128xf32>
    %3 = vector.broadcast %2 : vector<1x128xf32> to vector<256x128xf32>
    %4 = arith.mulf %1, %3 : vector<256x128xf32>
    %c0_3 = arith.constant 0 : index
    %c0_4 = arith.constant 0 : index
    %5 = vector.load %arg3[%c0_3, %c0_4] : memref<1x128xf32, #tpu.memory_space<vmem>>, vector<1x128xf32>
    %6 = vector.broadcast %5 : vector<1x128xf32> to vector<256x128xf32>
    %7 = arith.addf %4, %6 : vector<256x128xf32>
    %cst = arith.constant 0.000000e+00 : f32
    %8 = vector.broadcast %cst : f32 to vector<256x128xf32>
    %9 = arith.maximumf %7, %8 : vector<256x128xf32>
    %10 = arith.truncf %9 : vector<256x128xf32> to vector<256x128xbf16>
    %c0_5 = arith.constant 0 : index
    %c0_6 = arith.constant 0 : index
    %11 = vector.load %arg4[%c0_5, %c0_6] : memref<256x128xbf16, #tpu.memory_space<vmem>>, vector<256x128xbf16>
    tpu.vector_store %arg4[%c0_5, %c0_6], %10 {strides = array<i32>} : memref<256x128xbf16, #tpu.memory_space<vmem>>, vector<256x128xbf16>,
    return
  }
  func.func @transform_0(%arg0: i32) -> (i32, i32) {
    %c0_i32 = arith.constant 0 : i32
    %c0_i32_0 = arith.constant 0 : i32
    return %arg0, %c0_i32 : i32, i32
  }
  func.func @transform_1(%arg0: i32) -> (i32, i32) {
    %c0_i32 = arith.constant 0 : i32
    %c0_i32_0 = arith.constant 0 : i32
    %c0_i32_1 = arith.constant 0 : i32
    return %c0_i32, %c0_i32_0 : i32, i32
  }
  func.func @transform_2(%arg0: i32) -> (i32, i32) {
    %c0_i32 = arith.constant 0 : i32
    %c0_i32_0 = arith.constant 0 : i32
    %c0_i32_1 = arith.constant 0 : i32
    return %c0_i32, %c0_i32_0 : i32, i32
  }
  func.func @transform_3(%arg0: i32) -> (i32, i32) {
    %c0_i32 = arith.constant 0 : i32
    %c0_i32_0 = arith.constant 0 : i32
    return %arg0, %c0_i32 : i32, i32
  }
}

module attributes {stable_mosaic.version = 11 : i64} {
  func.func @scale_bias2_add_relu_kernel(%arg0: i32, %arg1: memref<256x128xbf16, #tpu.memory_space<vmem>>, %arg2: memref<256x128xbf16, #tpu.memory_space<vmem>>, %arg3: memref<1x128xf32, #tpu.memory_space<vmem>>, %arg4: memref<1x128xf32, #tpu.memory_space<vmem>>, %arg5: memref<1x128xf32, #tpu.memory_space<vmem>>, %arg6: memref<1x128xf32, #tpu.memory_space<vmem>>, %arg7: memref<256x128xf32, #tpu.memory_space<vmem>>) attributes {dimension_semantics = [#tpu.dimension_semantics<parallel>], iteration_bounds = array<i64: 1>, scalar_prefetch = 0 : i64, scratch_operands = 0 : i64, tpu.core_type = #tpu.core_type<tc>, window_params = [{transform_indices = @transform_0, window_bounds = array<i64: 256, 128>}, {transform_indices = @transform_1, window_bounds = array<i64: 256, 128>}, {pipeline_mode = #tpu.pipeline_mode<synchronous>, transform_indices = @transform_2, window_bounds = array<i64: 1, 128>}, {pipeline_mode = #tpu.pipeline_mode<synchronous>, transform_indices = @transform_3, window_bounds = array<i64: 1, 128>}, {pipeline_mode = #tpu.pipeline_mode<synchronous>, transform_indices = @transform_4, window_bounds = array<i64: 1, 128>}, {pipeline_mode = #tpu.pipeline_mode<synchronous>, transform_indices = @transform_5, window_bounds = array<i64: 1, 128>}, {transform_indices = @transform_6, window_bounds = array<i64: 256, 128>}]} {
    %c0 = arith.constant 0 : index
    %c0_0 = arith.constant 0 : index
    %0 = vector.load %arg1[%c0, %c0_0] : memref<256x128xbf16, #tpu.memory_space<vmem>>, vector<256x128xbf16>
    %1 = arith.extf %0 : vector<256x128xbf16> to vector<256x128xf32>
    %c0_1 = arith.constant 0 : index
    %c0_2 = arith.constant 0 : index
    %2 = vector.load %arg3[%c0_1, %c0_2] : memref<1x128xf32, #tpu.memory_space<vmem>>, vector<1x128xf32>
    %3 = vector.broadcast %2 : vector<1x128xf32> to vector<256x128xf32>
    %4 = arith.mulf %1, %3 : vector<256x128xf32>
    %c0_3 = arith.constant 0 : index
    %c0_4 = arith.constant 0 : index
    %5 = vector.load %arg4[%c0_3, %c0_4] : memref<1x128xf32, #tpu.memory_space<vmem>>, vector<1x128xf32>
    %6 = vector.broadcast %5 : vector<1x128xf32> to vector<256x128xf32>
    %7 = arith.addf %4, %6 : vector<256x128xf32>
    %c0_5 = arith.constant 0 : index
    %c0_6 = arith.constant 0 : index
    %8 = vector.load %arg2[%c0_5, %c0_6] : memref<256x128xbf16, #tpu.memory_space<vmem>>, vector<256x128xbf16>
    %9 = arith.extf %8 : vector<256x128xbf16> to vector<256x128xf32>
    %c0_7 = arith.constant 0 : index
    %c0_8 = arith.constant 0 : index
    %10 = vector.load %arg5[%c0_7, %c0_8] : memref<1x128xf32, #tpu.memory_space<vmem>>, vector<1x128xf32>
    %11 = vector.broadcast %10 : vector<1x128xf32> to vector<256x128xf32>
    %12 = arith.mulf %9, %11 : vector<256x128xf32>
    %c0_9 = arith.constant 0 : index
    %c0_10 = arith.constant 0 : index
    %13 = vector.load %arg6[%c0_9, %c0_10] : memref<1x128xf32, #tpu.memory_space<vmem>>, vector<1x128xf32>
    %14 = vector.broadcast %13 : vector<1x128xf32> to vector<256x128xf32>
    %15 = arith.addf %12, %14 : vector<256x128xf32>
    %16 = arith.addf %7, %15 : vector<256x128xf32>
    %cst = arith.constant 0.000000e+00 : f32
    %17 = vector.broadcast %cst : f32 to vector<256x128xf32>
    %18 = arith.maximumf %16, %17 : vector<256x128xf32>
    %c0_11 = arith.constant 0 : index
    %c0_12 = arith.constant 0 : index
    %19 = vector.load %arg7[%c0_11, %c0_12] : memref<256x128xf32, #tpu.memory_space<vmem>>, vector<256x128xf32>
    tpu.vector_store %arg7[%c0_11, %c0_12], %18 {strides = array<i32>} : memref<256x128xf32, #tpu.memory_space<vmem>>, vector<256x128xf32>,
    return
  }
  func.func @transform_0(%arg0: i32) -> (i32, i32) {
    %c0_i32 = arith.constant 0 : i32
    %c0_i32_0 = arith.constant 0 : i32
    return %arg0, %c0_i32 : i32, i32
  }
  func.func @transform_1(%arg0: i32) -> (i32, i32) {
    %c0_i32 = arith.constant 0 : i32
    %c0_i32_0 = arith.constant 0 : i32
    return %arg0, %c0_i32 : i32, i32
  }
  func.func @transform_2(%arg0: i32) -> (i32, i32) {
    %c0_i32 = arith.constant 0 : i32
    %c0_i32_0 = arith.constant 0 : i32
    %c0_i32_1 = arith.constant 0 : i32
    return %c0_i32, %c0_i32_0 : i32, i32
  }
  func.func @transform_3(%arg0: i32) -> (i32, i32) {
    %c0_i32 = arith.constant 0 : i32
    %c0_i32_0 = arith.constant 0 : i32
    %c0_i32_1 = arith.constant 0 : i32
    return %c0_i32, %c0_i32_0 : i32, i32
  }
  func.func @transform_4(%arg0: i32) -> (i32, i32) {
    %c0_i32 = arith.constant 0 : i32
    %c0_i32_0 = arith.constant 0 : i32
    %c0_i32_1 = arith.constant 0 : i32
    return %c0_i32, %c0_i32_0 : i32, i32
  }
  func.func @transform_5(%arg0: i32) -> (i32, i32) {
    %c0_i32 = arith.constant 0 : i32
    %c0_i32_0 = arith.constant 0 : i32
    %c0_i32_1 = arith.constant 0 : i32
    return %c0_i32, %c0_i32_0 : i32, i32
  }
  func.func @transform_6(%arg0: i32) -> (i32, i32) {
    %c0_i32 = arith.constant 0 : i32
    %c0_i32_0 = arith.constant 0 : i32
    return %arg0, %c0_i32 : i32, i32
  }
}

</mosaic_0001>

<bundles_post_ra>
// kernel: basic_block_forward.6
= control target key start
LH: loop header
LB: loop body
LE: loop exit
PB: predicated region body
PF: predicated region fallthrough
CT: control target
= control target key end

     0   :  { %s782_s0 = inlined_call_operand.vmem [shape: bf16[256,128], index: 0, kind: input, shape index: {}]   ;;  %s783_s1 = inlined_call_operand.vmem [shape: f32[1,128], index: 1, kind: input, shape index: {}]   ;;  %s784_s2 = inlined_call_operand.vmem [shape: f32[1,128], index: 2, kind: input, shape index: {}]   ;;  %s785_s3 = inlined_call_operand.vmem [shape: bf16[256,128], index: 3, kind: output, shape index: {}]  }
   0x1   :  { %v419_v0 = vld [vmem:[%s782_s0] sm:$0xff]   ;;  %v562_v4 = vld [vmem:[%s782_s0 + $0x8] sm:$0xff]   ;;  %v563_v5 = vld [vmem:[%s782_s0 + $0x10] sm:$0xff]  }
   0x2   :  { %v618_v1 = vld [vmem:[%s783_s1] ss:$0 sm:$0xff]  ;;  %v420_v2 = vunpack.c.l.bf16 %v419_v0  ;;  %v421_v3 = vunpack.c.h.bf16 %v419_v0  ;;  %v564_v6 = vld [vmem:[%s782_s0 + $0x18] sm:$0xff]   ;;  %v424_v8 = vunpack.c.l.bf16 %v562_v4  ;;  %v425_v9 = vunpack.c.h.bf16 %v562_v4  ;;  %v566_v33 = vld [vmem:[%s782_s0 + $0x28] sm:$0xff]  }
   0x3   :  { %v632_v7 = vld [vmem:[%s784_s2] ss:$0 sm:$0xff]  ;;  %v428_v10 = vunpack.c.l.bf16 %v563_v5  ;;  %v429_v11 = vunpack.c.h.bf16 %v563_v5  ;;  %v432_v14 = vunpack.c.l.bf16 %v564_v6  ;;  %v433_v15 = vunpack.c.h.bf16 %v564_v6  ;;  %v567_v38 = vld [vmem:[%s782_s0 + $0x30] sm:$0xff]   ;;  %v568_v43 = vld [vmem:[%s782_s0 + $0x38] sm:$0xff]  }
   0x4   :  { %v85_v12 = vmul.f32 %v420_v2, %v618_v1  ;;  %v86_v13 = vmul.f32 %v421_v3, %v618_v1  ;;  %v87_v16 = vmul.f32 %v424_v8, %v618_v1  ;;  %v88_v17 = vmul.f32 %v425_v9, %v618_v1  ;;  %v565_v28 = vld [vmem:[%s782_s0 + $0x20] sm:$0xff]  }
   0x5   :  { %v89_v18 = vmul.f32 %v428_v10, %v618_v1  ;;  %v90_v19 = vmul.f32 %v429_v11, %v618_v1  ;;  %v91_v22 = vmul.f32 %v432_v14, %v618_v1  ;;  %v92_v23 = vmul.f32 %v433_v15, %v618_v1  ;;  %v569_v0 = vld [vmem:[%s782_s0 + $0x40] sm:$0xff]   ;;  %v570_v11 = vld [vmem:[%s782_s0 + $0x48] sm:$0xff]  }
   0x6   :  { %v124_v20 = vadd.f32 %v632_v7, %v85_v12  ;;  %v125_v21 = vadd.f32 %v632_v7, %v86_v13  ;;  %v126_v24 = vadd.f32 %v632_v7, %v87_v16  ;;  %v127_v25 = vadd.f32 %v632_v7, %v88_v17  ;;  %v571_v16 = vld [vmem:[%s782_s0 + $0x50] sm:$0xff]  }
   0x7   :  { %v128_v26 = vadd.f32 %v632_v7, %v89_v18  ;;  %v129_v27 = vadd.f32 %v632_v7, %v90_v19  ;;  %v130_v31 = vadd.f32 %v632_v7, %v91_v22  ;;  %v131_v32 = vadd.f32 %v632_v7, %v92_v23 }
   0x8   :  { %v156_v29 = vmax.f32 %v124_v20, 0.0  ;;  %v157_v30 = vmax.f32 %v125_v21, 0.0  ;;  %v158_v34 = vmax.f32 %v126_v24, 0.0  ;;  %v159_v35 = vmax.f32 %v127_v25, 0.0  ;;  %v572_v25 = vld [vmem:[%s782_s0 + $0x58] sm:$0xff]  }
   0x9   :  { %v160_v36 = vmax.f32 %v128_v26, 0.0  ;;  %v161_v37 = vmax.f32 %v129_v27, 0.0  ;;  %v162_v40 = vmax.f32 %v130_v31, 0.0  ;;  %v163_v41 = vmax.f32 %v131_v32, 0.0 }
   0xa   :  { %v485_v39 = vpack.c.bf16 %v157_v30, %v156_v29  ;;  %v436_v42 = vunpack.c.l.bf16 %v565_v28  ;;  %v490_v44 = vpack.c.bf16 %v159_v35, %v158_v34  ;;  %v437_v46 = vunpack.c.h.bf16 %v565_v28 }
   0xb   :  { %v495_v45 = vpack.c.bf16 %v161_v37, %v160_v36  ;;  %v440_v47 = vunpack.c.l.bf16 %v566_v33  ;;  %v500_v48 = vpack.c.bf16 %v163_v41, %v162_v40  ;;  %v441_v50 = vunpack.c.h.bf16 %v566_v33 }
   0xc   :  { %486 = vst [vmem:[%s785_s3] sm:$0xff] %v485_v39   ;;  %v93_v49 = vmul.f32 %v436_v42, %v618_v1  ;;  %v444_v51 = vunpack.c.l.bf16 %v567_v38  ;;  %577 = vst [vmem:[%s785_s3 + $0x8] sm:$0xff] %v490_v44   ;;  %v94_v52 = vmul.f32 %v437_v46, %v618_v1  ;;  %v445_v54 = vunpack.c.h.bf16 %v567_v38  ;;  %v573_v38 = vld [vmem:[%s782_s0 + $0x60] sm:$0xff]  }
   0xd   :  { %578 = vst [vmem:[%s785_s3 + $0x10] sm:$0xff] %v495_v45   ;;  %v95_v53 = vmul.f32 %v440_v47, %v618_v1  ;;  %v448_v55 = vunpack.c.l.bf16 %v568_v43  ;;  %579 = vst [vmem:[%s785_s3 + $0x18] sm:$0xff] %v500_v48   ;;  %v96_v57 = vmul.f32 %v441_v50, %v618_v1  ;;  %v449_v59 = vunpack.c.h.bf16 %v568_v43 }
   0xe   :  { %v132_v56 = vadd.f32 %v632_v7, %v93_v49  ;;  %v97_v58 = vmul.f32 %v444_v51, %v618_v1  ;;  %v133_v60 = vadd.f32 %v632_v7, %v94_v52  ;;  %v98_v62 = vmul.f32 %v445_v54, %v618_v1  ;;  %v574_v51 = vld [vmem:[%s782_s0 + $0x68] sm:$0xff]  }
   0xf   :  { %v134_v61 = vadd.f32 %v632_v7, %v95_v53  ;;  %v99_v63 = vmul.f32 %v448_v55, %v618_v1  ;;  %v135_v3 = vadd.f32 %v632_v7, %v96_v57  ;;  %v100_v5 = vmul.f32 %v449_v59, %v618_v1 }
  0x10   :  { %v164_v2 = vmax.f32 %v132_v56, 0.0  ;;  %v136_v4 = vadd.f32 %v632_v7, %v97_v58  ;;  %v165_v6 = vmax.f32 %v133_v60, 0.0  ;;  %v137_v9 = vadd.f32 %v632_v7, %v98_v62  ;;  %v575_v60 = vld [vmem:[%s782_s0 + $0x70] sm:$0xff]  }
  0x11   :  { %v166_v8 = vmax.f32 %v134_v61, 0.0  ;;  %v138_v10 = vadd.f32 %v632_v7, %v99_v63  ;;  %v167_v12 = vmax.f32 %v135_v3, 0.0  ;;  %v139_v14 = vadd.f32 %v632_v7, %v100_v5 }
  0x12   :  { %v168_v13 = vmax.f32 %v136_v4, 0.0  ;;  %v452_v15 = vunpack.c.l.bf16 %v569_v0  ;;  %v505_v17 = vpack.c.bf16 %v165_v6, %v164_v2  ;;  %v169_v18 = vmax.f32 %v137_v9, 0.0  ;;  %v576_v2 = vld [vmem:[%s782_s0 + $0x78] sm:$0xff]  }
  0x13   :  { %v170_v19 = vmax.f32 %v138_v10, 0.0  ;;  %v453_v20 = vunpack.c.h.bf16 %v569_v0  ;;  %v510_v21 = vpack.c.bf16 %v167_v12, %v166_v8  ;;  %v171_v22 = vmax.f32 %v139_v14, 0.0 }
  0x14   :  { %v101_v23 = vmul.f32 %v452_v15, %v618_v1  ;;  %v456_v24 = vunpack.c.l.bf16 %v570_v11  ;;  %580 = vst [vmem:[%s785_s3 + $0x20] sm:$0xff] %v505_v17   ;;  %v515_v26 = vpack.c.bf16 %v169_v18, %v168_v13  ;;  %v457_v28 = vunpack.c.h.bf16 %v570_v11 }
  0x15   :  { %v102_v27 = vmul.f32 %v453_v20, %v618_v1  ;;  %v460_v29 = vunpack.c.l.bf16 %v571_v16  ;;  %581 = vst [vmem:[%s785_s3 + $0x28] sm:$0xff] %v510_v21   ;;  %v520_v30 = vpack.c.bf16 %v171_v22, %v170_v19  ;;  %v461_v33 = vunpack.c.h.bf16 %v571_v16 }
  0x16   :  { %v140_v31 = vadd.f32 %v632_v7, %v101_v23  ;;  %v103_v32 = vmul.f32 %v456_v24, %v618_v1  ;;  %582 = vst [vmem:[%s785_s3 + $0x30] sm:$0xff] %v515_v26   ;;  %v104_v35 = vmul.f32 %v457_v28, %v618_v1  ;;  %v464_v37 = vunpack.c.l.bf16 %v572_v25 }
  0x17   :  { %v141_v34 = vadd.f32 %v632_v7, %v102_v27  ;;  %v105_v36 = vmul.f32 %v460_v29, %v618_v1  ;;  %583 = vst [vmem:[%s785_s3 + $0x38] sm:$0xff] %v520_v30   ;;  %v106_v41 = vmul.f32 %v461_v33, %v618_v1  ;;  %v465_v42 = vunpack.c.h.bf16 %v572_v25 }
  0x18   :  { %v172_v39 = vmax.f32 %v140_v31, 0.0  ;;  %v142_v40 = vadd.f32 %v632_v7, %v103_v32  ;;  %v143_v44 = vadd.f32 %v632_v7, %v104_v35  ;;  %v107_v46 = vmul.f32 %v464_v37, %v618_v1 }
  0x19   :  { %v173_v43 = vmax.f32 %v141_v34, 0.0  ;;  %v144_v45 = vadd.f32 %v632_v7, %v105_v36  ;;  %v145_v48 = vadd.f32 %v632_v7, %v106_v41  ;;  %v108_v49 = vmul.f32 %v465_v42, %v618_v1 }
  0x1a   :  { %v174_v47 = vmax.f32 %v142_v40, 0.0  ;;  %v468_v50 = vunpack.c.l.bf16 %v573_v38  ;;  %v175_v53 = vmax.f32 %v143_v44, 0.0  ;;  %v146_v55 = vadd.f32 %v632_v7, %v107_v46 }
  0x1b   :  { %v525_v52 = vpack.c.bf16 %v173_v43, %v172_v39  ;;  %v176_v54 = vmax.f32 %v144_v45, 0.0  ;;  %v177_v56 = vmax.f32 %v145_v48, 0.0  ;;  %v147_v57 = vadd.f32 %v632_v7, %v108_v49 }
  0x1c   :  { %v469_v58 = vunpack.c.h.bf16 %v573_v38  ;;  %v109_v59 = vmul.f32 %v468_v50, %v618_v1  ;;  %v530_v61 = vpack.c.bf16 %v175_v53, %v174_v47  ;;  %v178_v62 = vmax.f32 %v146_v55, 0.0 }
  0x1d   :  { %584 = vst [vmem:[%s785_s3 + $0x40] sm:$0xff] %v525_v52   ;;  %v472_v63 = vunpack.c.l.bf16 %v574_v51  ;;  %v473_v0 = vunpack.c.h.bf16 %v574_v51  ;;  %v535_v3 = vpack.c.bf16 %v177_v56, %v176_v54  ;;  %v179_v4 = vmax.f32 %v147_v57, 0.0 }
  0x1e   :  { %v110_v5 = vmul.f32 %v469_v58, %v618_v1  ;;  %v148_v6 = vadd.f32 %v632_v7, %v109_v59  ;;  %585 = vst [vmem:[%s785_s3 + $0x48] sm:$0xff] %v530_v61   ;;  %v476_v10 = vunpack.c.l.bf16 %v575_v60  ;;  %v477_v11 = vunpack.c.h.bf16 %v575_v60 }
  0x1f   :  { %v111_v8 = vmul.f32 %v472_v63, %v618_v1  ;;  %v112_v9 = vmul.f32 %v473_v0, %v618_v1  ;;  %586 = vst [vmem:[%s785_s3 + $0x50] sm:$0xff] %v535_v3   ;;  %v540_v12 = vpack.c.bf16 %v179_v4, %v178_v62  ;;  %v480_v15 = vunpack.c.l.bf16 %v576_v2 }
  0x20   :  { %v149_v13 = vadd.f32 %v632_v7, %v110_v5  ;;  %v180_v14 = vmax.f32 %v148_v6, 0.0  ;;  %v113_v18 = vmul.f32 %v476_v10, %v618_v1  ;;  %v114_v19 = vmul.f32 %v477_v11, %v618_v1 }
  0x21   :  { %v150_v16 = vadd.f32 %v632_v7, %v111_v8  ;;  %v151_v17 = vadd.f32 %v632_v7, %v112_v9  ;;  %587 = vst [vmem:[%s785_s3 + $0x58] sm:$0xff] %v540_v12   ;;  %v481_v21 = vunpack.c.h.bf16 %v576_v2  ;;  %v115_v22 = vmul.f32 %v480_v15, %v618_v1 }
  0x22   :  { %v181_v20 = vmax.f32 %v149_v13, 0.0  ;;  %v152_v25 = vadd.f32 %v632_v7, %v113_v18  ;;  %v153_v26 = vadd.f32 %v632_v7, %v114_v19 }
  0x23   :  { %v182_v23 = vmax.f32 %v150_v16, 0.0  ;;  %v183_v24 = vmax.f32 %v151_v17, 0.0  ;;  %v116_v28 = vmul.f32 %v481_v21, %v618_v1  ;;  %v154_v29 = vadd.f32 %v632_v7, %v115_v22 }
  0x24   :  { %v545_v27 = vpack.c.bf16 %v181_v20, %v180_v14  ;;  %v184_v31 = vmax.f32 %v152_v25, 0.0  ;;  %v185_v32 = vmax.f32 %v153_v26, 0.0 }
  0x25   :  { %v550_v30 = vpack.c.bf16 %v183_v24, %v182_v23  ;;  %v155_v33 = vadd.f32 %v632_v7, %v116_v28  ;;  %v186_v34 = vmax.f32 %v154_v29, 0.0 }
  0x26   :  { %588 = vst [vmem:[%s785_s3 + $0x60] sm:$0xff] %v545_v27   ;;  %v555_v35 = vpack.c.bf16 %v185_v32, %v184_v31 }
  0x27   :  { %589 = vst [vmem:[%s785_s3 + $0x68] sm:$0xff] %v550_v30   ;;  %v187_v36 = vmax.f32 %v155_v33, 0.0 }
  0x28   :  { %590 = vst [vmem:[%s785_s3 + $0x70] sm:$0xff] %v555_v35  }
  0x29   :  { %v560_v1 = vpack.c.bf16 %v187_v36, %v186_v34 }
  0x2b   :  { %591 = vst [vmem:[%s785_s3 + $0x78] sm:$0xff] %v560_v1  }

// kernel: basic_block_forward.5
= control target key start
LH: loop header
LB: loop body
LE: loop exit
PB: predicated region body
PF: predicated region fallthrough
CT: control target
= control target key end

     0   :  { %v940_v24 = vmov 0.0   ;;  %s1174_s1 = inlined_call_operand.vmem [shape: bf16[128,128], index: 1, kind: input, shape index: {}]   ;;  %s1175_s0 = inlined_call_operand.vmem [shape: bf16[256,128], index: 0, kind: input, shape index: {}]   ;;  %s1176_s3 = inlined_call_operand.vmem [shape: f32[8,128], index: 3, kind: output, shape index: {1}]   ;;  %s1177_s2 = inlined_call_operand.vmem [shape: bf16[256,128], index: 2, kind: output, shape index: {0}]  }
   0x1   :  { %v916_v0 = vld [vmem:[%s1174_s1] sm:$0xff]   ;;  %v917_v1 = vld [vmem:[%s1174_s1 + $0x8] sm:$0xff]   ;;  %v918_v2 = vld [vmem:[%s1174_s1 + $0x10] sm:$0xff]   ;;  %635 = vst [vmem:[%s1176_s3 + $0x2] sm:$0x3f] %v940_v24 }
   0x2   :  { %851 = vmatprep.subr.bf16.mxu0 %v916_v0  ;;  %899 = vmatprep.subr.bf16.mxu1 %v916_v0  ;;  %v919_v3 = vld [vmem:[%s1174_s1 + $0x18] sm:$0xff]   ;;  %v924_v4 = vld [vmem:[%s1175_s0] sm:$0xff]   ;;  %v921_v6 = vld [vmem:[%s1174_s1 + $0x28] sm:$0xff]  }
   0x3   :  { %852 = vmatpush3.bf16.msra.mxu0 %v916_v0  ;;  %907 = vmatpush3.bf16.msra.mxu1 %v916_v0  ;;  %v920_v5 = vld [vmem:[%s1174_s1 + $0x20] sm:$0xff]   ;;  %v922_v8 = vld [vmem:[%s1174_s1 + $0x30] sm:$0xff]   ;;  %v923_v9 = vld [vmem:[%s1174_s1 + $0x38] sm:$0xff]  }
   0x4   :  { %853 = vmatprep.subr.bf16.mxu0 %v917_v1  ;;  %900 = vmatprep.subr.bf16.mxu1 %v917_v1  ;;  %v932_v7 = vld [vmem:[%s1175_s0 + $0x40] sm:$0xff]   ;;  %v925_v10 = vld [vmem:[%s1175_s0 + $0x8] sm:$0xff]   ;;  %v926_v12 = vld [vmem:[%s1175_s0 + $0x10] sm:$0xff]  }
   0x5   :  { %867 = vmatprep.mubr.bf16.mxu0 %v924_v4  ;;  %883 = vmatprep.mubr.bf16.mxu1 %v932_v7  ;;  %v933_v11 = vld [vmem:[%s1175_s0 + $0x48] sm:$0xff]   ;;  %v934_v13 = vld [vmem:[%s1175_s0 + $0x50] sm:$0xff]   ;;  %v927_v14 = vld [vmem:[%s1175_s0 + $0x18] sm:$0xff]  }
   0x6   :  { %v935_v15 = vld [vmem:[%s1175_s0 + $0x58] sm:$0xff]   ;;  %v928_v16 = vld [vmem:[%s1175_s0 + $0x20] sm:$0xff]   ;;  %v929_v18 = vld [vmem:[%s1175_s0 + $0x28] sm:$0xff]  }
   0x7   :  { %854 = vmatpush3.bf16.msra.mxu0 %v917_v1  ;;  %908 = vmatpush3.bf16.msra.mxu1 %v917_v1  ;;  %v936_v17 = vld [vmem:[%s1175_s0 + $0x60] sm:$0xff]   ;;  %v937_v19 = vld [vmem:[%s1175_s0 + $0x68] sm:$0xff]   ;;  %v930_v20 = vld [vmem:[%s1175_s0 + $0x30] sm:$0xff]  }
   0x8   :  { %855 = vmatprep.subr.bf16.mxu0 %v918_v2  ;;  %901 = vmatprep.subr.bf16.mxu1 %v918_v2  ;;  %v938_v21 = vld [vmem:[%s1175_s0 + $0x70] sm:$0xff]   ;;  %v931_v22 = vld [vmem:[%s1175_s0 + $0x38] sm:$0xff]  }
   0x9   :  { %v939_v23 = vld [vmem:[%s1175_s0 + $0x78] sm:$0xff]  }
   0xb   :  { %856 = vmatpush3.bf16.msra.mxu0 %v918_v2  ;;  %909 = vmatpush3.bf16.msra.mxu1 %v918_v2 }
   0xc   :  { %857 = vmatprep.subr.bf16.mxu0 %v919_v3  ;;  %902 = vmatprep.subr.bf16.mxu1 %v919_v3 }
   0xf   :  { %858 = vmatpush3.bf16.msra.mxu0 %v919_v3  ;;  %910 = vmatpush3.bf16.msra.mxu1 %v919_v3 }
  0x10   :  { %859 = vmatprep.subr.bf16.mxu0 %v920_v5  ;;  %903 = vmatprep.subr.bf16.mxu1 %v920_v5 }
  0x13   :  { %860 = vmatpush3.bf16.msra.mxu0 %v920_v5  ;;  %911 = vmatpush3.bf16.msra.mxu1 %v920_v5 }
  0x14   :  { %861 = vmatprep.subr.bf16.mxu0 %v921_v6  ;;  %904 = vmatprep.subr.bf16.mxu1 %v921_v6 }
  0x17   :  { %862 = vmatpush3.bf16.msra.mxu0 %v921_v6  ;;  %912 = vmatpush3.bf16.msra.mxu1 %v921_v6 }
  0x18   :  { %863 = vmatprep.subr.bf16.mxu0 %v922_v8  ;;  %905 = vmatprep.subr.bf16.mxu1 %v922_v8 }
  0x1b   :  { %864 = vmatpush3.bf16.msra.mxu0 %v922_v8  ;;  %913 = vmatpush3.bf16.msra.mxu1 %v922_v8 }
  0x1c   :  { %865 = vmatprep.subr.bf16.mxu0 %v923_v9  ;;  %906 = vmatprep.subr.bf16.mxu1 %v923_v9 }
  0x1f   :  { %866 = vmatpush3.bf16.msra.mxu0 %v923_v9  ;;  %914 = vmatpush3.bf16.msra.mxu1 %v923_v9 }
  0x22   :  { %868 = vmatmul.mubr.bf16.vlgmr.msra.gmra.mrb[0].mxu0 %v925_v10  ;;  %884 = vmatmul.mubr.bf16.vlgmr.msra.gmra.mrb[0].mxu1 %v933_v11 }
  0x23   :  { %871 = vmatprep.mubr.bf16.mxu0 %v926_v12  ;;  %887 = vmatprep.mubr.bf16.mxu1 %v934_v13 }
  0x2a   :  { %872 = vmatmul.mubr.bf16.gmra.mrb[4].mxu0 %v927_v14  ;;  %888 = vmatmul.mubr.bf16.gmra.mrb[4].mxu1 %v935_v15 }
  0x2b   :  { %875 = vmatprep.mubr.bf16.mxu0 %v928_v16  ;;  %891 = vmatprep.mubr.bf16.mxu1 %v936_v17 }
  0x32   :  { %876 = vmatmul.mubr.bf16.gmra.mrb[8].mxu0 %v929_v18  ;;  %892 = vmatmul.mubr.bf16.gmra.mrb[8].mxu1 %v937_v19 }
  0x33   :  { %879 = vmatprep.mubr.bf16.mxu0 %v930_v20  ;;  %895 = vmatprep.mubr.bf16.mxu1 %v938_v21 }
  0x3a   :  { %880 = vmatmul.mubr.bf16.gmra.mrb[12].mxu0 %v931_v22  ;;  %896 = vmatmul.mubr.bf16.gmra.mrb[12].mxu1 %v939_v23 }
  0xf5   :  { %v869_v25 = vpop.f32.mrb[0].mxu0  ;;  %v1036_v26 = vpop.f32.mrb[0].mxu1 }
  0xf6   :  { %v240_v27 = vpop.f32.mrb[1].mxu0  ;;  %v1038_v28 = vpop.f32.mrb[1].mxu1  ;;  %v567_v40 = vmul.f32 %v869_v25, %v869_v25 }
  0xf7   :  { %v870_v29 = vpop.f32.mrb[2].mxu0  ;;  %v1040_v30 = vpop.f32.mrb[2].mxu1  ;;  %v565_v31 = vmul.f32 %v240_v27, %v240_v27 }
  0xf8   :  { %v740_v32 = vpack.c.bf16 %v870_v29, %v869_v25  ;;  %v243_v33 = vpop.f32.mrb[3].mxu0  ;;  %v780_v34 = vpack.c.bf16 %v1040_v30, %v1036_v26  ;;  %v1044_v35 = vpop.f32.mrb[3].mxu1  ;;  %v568_v43 = vmul.f32 %v870_v29, %v870_v29 }
  0xf9   :  { %v735_v36 = vpack.c.bf16 %v243_v33, %v240_v27  ;;  %v527_v37 = vadd.f32 %v243_v33, %v240_v27  ;;  %v566_v38 = vmul.f32 %v243_v33, %v243_v33  ;;  %v775_v39 = vpack.c.bf16 %v1044_v35, %v1038_v28 }
  0xfa   :  { %812 = vst [vmem:[%s1177_s2 + $0x8] sm:$0xff] %v740_v32   ;;  %820 = vst [vmem:[%s1177_s2 + $0x48] sm:$0xff] %v780_v34  }
  0xfb   :  { %736 = vst [vmem:[%s1177_s2] sm:$0xff] %v735_v36   ;;  %v528_v41 = vadd.f32 %v869_v25, %v527_v37  ;;  %v597_v42 = vadd.f32 %v566_v38, %v565_v31  ;;  %819 = vst [vmem:[%s1177_s2 + $0x40] sm:$0xff] %v775_v39  }
  0xfd   :  { %v598_v44 = vadd.f32 %v597_v42, %v567_v40  ;;  %v873_v45 = vpop.f32.mrb[4].mxu0  ;;  %v529_v46 = vadd.f32 %v870_v29, %v528_v41  ;;  %v1060_v47 = vpop.f32.mrb[4].mxu1 }
  0xfe   :  { %v256_v48 = vpop.f32.mrb[5].mxu0  ;;  %v1062_v49 = vpop.f32.mrb[5].mxu1  ;;  %v571_v0 = vmul.f32 %v873_v45, %v873_v45 }
  0xff   :  { %v530_v50 = vadd.f32 %v529_v46, %v256_v48  ;;  %v569_v51 = vmul.f32 %v256_v48, %v256_v48  ;;  %v599_v52 = vadd.f32 %v598_v44, %v568_v43  ;;  %v874_v53 = vpop.f32.mrb[6].mxu0  ;;  %v1064_v54 = vpop.f32.mrb[6].mxu1 }
 0x100   :  { %v750_v55 = vpack.c.bf16 %v874_v53, %v873_v45  ;;  %v259_v56 = vpop.f32.mrb[7].mxu0  ;;  %v790_v57 = vpack.c.bf16 %v1064_v54, %v1060_v47  ;;  %v1068_v58 = vpop.f32.mrb[7].mxu1  ;;  %v572_v3 = vmul.f32 %v874_v53, %v874_v53 }
 0x101   :  { %v600_v59 = vadd.f32 %v599_v52, %v569_v51  ;;  %v745_v60 = vpack.c.bf16 %v259_v56, %v256_v48  ;;  %v531_v61 = vadd.f32 %v530_v50, %v259_v56  ;;  %v570_v62 = vmul.f32 %v259_v56, %v259_v56 }
 0x102   :  { %814 = vst [vmem:[%s1177_s2 + $0x18] sm:$0xff] %v750_v55   ;;  %822 = vst [vmem:[%s1177_s2 + $0x58] sm:$0xff] %v790_v57   ;;  %v785_v63 = vpack.c.bf16 %v1068_v58, %v1062_v49 }
 0x103   :  { %813 = vst [vmem:[%s1177_s2 + $0x10] sm:$0xff] %v745_v60   ;;  %v532_v1 = vadd.f32 %v873_v45, %v531_v61  ;;  %v601_v2 = vadd.f32 %v600_v59, %v570_v62  ;;  %v581_v62 = vmul.f32 %v1038_v28, %v1038_v28 }
 0x104   :  { %821 = vst [vmem:[%s1177_s2 + $0x50] sm:$0xff] %v785_v63  }
 0x105   :  { %v602_v4 = vadd.f32 %v601_v2, %v571_v0  ;;  %v877_v5 = vpop.f32.mrb[8].mxu0  ;;  %v533_v6 = vadd.f32 %v874_v53, %v532_v1  ;;  %v1084_v7 = vpop.f32.mrb[8].mxu1 }
 0x106   :  { %v272_v8 = vpop.f32.mrb[9].mxu0  ;;  %v1086_v9 = vpop.f32.mrb[9].mxu1  ;;  %v575_v24 = vmul.f32 %v877_v5, %v877_v5 }
 0x107   :  { %v534_v10 = vadd.f32 %v533_v6, %v272_v8  ;;  %v573_v11 = vmul.f32 %v272_v8, %v272_v8  ;;  %v603_v12 = vadd.f32 %v602_v4, %v572_v3  ;;  %v878_v13 = vpop.f32.mrb[10].mxu0  ;;  %v1088_v14 = vpop.f32.mrb[10].mxu1  ;;  %v582_v3 = vmul.f32 %v1044_v35, %v1044_v35 }
 0x108   :  { %v760_v15 = vpack.c.bf16 %v878_v13, %v877_v5  ;;  %v275_v16 = vpop.f32.mrb[11].mxu0  ;;  %v800_v17 = vpack.c.bf16 %v1088_v14, %v1084_v7  ;;  %v1092_v18 = vpop.f32.mrb[11].mxu1  ;;  %v576_v29 = vmul.f32 %v878_v13, %v878_v13  ;;  %v583_v4 = vmul.f32 %v1036_v26, %v1036_v26 }
 0x109   :  { %v604_v19 = vadd.f32 %v603_v12, %v573_v11  ;;  %v755_v20 = vpack.c.bf16 %v275_v16, %v272_v8  ;;  %v535_v21 = vadd.f32 %v534_v10, %v275_v16  ;;  %v574_v22 = vmul.f32 %v275_v16, %v275_v16 }
 0x10a   :  { %816 = vst [vmem:[%s1177_s2 + $0x28] sm:$0xff] %v760_v15   ;;  %824 = vst [vmem:[%s1177_s2 + $0x68] sm:$0xff] %v800_v17   ;;  %v795_v23 = vpack.c.bf16 %v1092_v18, %v1086_v9  ;;  %v584_v8 = vmul.f32 %v1040_v30, %v1040_v30  ;;  %v586_v16 = vmul.f32 %v1068_v58, %v1068_v58 }
 0x10b   :  { %815 = vst [vmem:[%s1177_s2 + $0x20] sm:$0xff] %v755_v20   ;;  %v536_v25 = vadd.f32 %v877_v5, %v535_v21  ;;  %v605_v27 = vadd.f32 %v604_v19, %v574_v22 }
 0x10c   :  { %823 = vst [vmem:[%s1177_s2 + $0x60] sm:$0xff] %v795_v23  }
 0x10d   :  { %v606_v31 = vadd.f32 %v605_v27, %v575_v24  ;;  %v881_v32 = vpop.f32.mrb[12].mxu0  ;;  %v537_v33 = vadd.f32 %v878_v13, %v536_v25  ;;  %v1108_v34 = vpop.f32.mrb[12].mxu1  ;;  %v590_v25 = vmul.f32 %v1092_v18, %v1092_v18 }
 0x10e   :  { %v288_v36 = vpop.f32.mrb[13].mxu0  ;;  %v352_v37 = vpop.f32.mrb[13].mxu1  ;;  %v579_v55 = vmul.f32 %v881_v32, %v881_v32 }
 0x10f   :  { %v538_v38 = vadd.f32 %v537_v33, %v288_v36  ;;  %v577_v39 = vmul.f32 %v288_v36, %v288_v36  ;;  %v607_v40 = vadd.f32 %v606_v31, %v576_v29  ;;  %v882_v41 = vpop.f32.mrb[14].mxu0  ;;  %v1110_v42 = vpop.f32.mrb[14].mxu1 }
 0x110   :  { %v770_v43 = vpack.c.bf16 %v882_v41, %v881_v32  ;;  %v291_v44 = vpop.f32.mrb[15].mxu0  ;;  %v810_v45 = vpack.c.bf16 %v1110_v42, %v1108_v34  ;;  %v355_v46 = vpop.f32.mrb[15].mxu1  ;;  %v580_v59 = vmul.f32 %v882_v41, %v882_v41 }
 0x111   :  { %v608_v48 = vadd.f32 %v607_v40, %v577_v39  ;;  %v765_v50 = vpack.c.bf16 %v291_v44, %v288_v36  ;;  %v539_v51 = vadd.f32 %v538_v38, %v291_v44  ;;  %v578_v52 = vmul.f32 %v291_v44, %v291_v44 }
 0x112   :  { %818 = vst [vmem:[%s1177_s2 + $0x38] sm:$0xff] %v770_v43   ;;  %826 = vst [vmem:[%s1177_s2 + $0x78] sm:$0xff] %v810_v45   ;;  %v805_v53 = vpack.c.bf16 %v355_v46, %v352_v37  ;;  %v594_v40 = vmul.f32 %v355_v46, %v355_v46 }
 0x113   :  { %817 = vst [vmem:[%s1177_s2 + $0x30] sm:$0xff] %v765_v50   ;;  %v540_v56 = vadd.f32 %v881_v32, %v539_v51  ;;  %v609_v57 = vadd.f32 %v608_v48, %v578_v52 }
 0x114   :  { %825 = vst [vmem:[%s1177_s2 + $0x70] sm:$0xff] %v805_v53  }
 0x115   :  { %v610_v60 = vadd.f32 %v609_v57, %v579_v55  ;;  %v541_v61 = vadd.f32 %v882_v41, %v540_v56 }
 0x117   :  { %v542_v63 = vadd.f32 %v541_v61, %v1038_v28  ;;  %v611_v0 = vadd.f32 %v610_v60, %v580_v59  ;;  %v585_v28 = vmul.f32 %v1062_v49, %v1062_v49 }
 0x119   :  { %v612_v1 = vadd.f32 %v611_v0, %v581_v62  ;;  %v543_v2 = vadd.f32 %v542_v63, %v1044_v35 }
 0x11b   :  { %v544_v5 = vadd.f32 %v1036_v26, %v543_v2  ;;  %v613_v6 = vadd.f32 %v612_v1, %v582_v3  ;;  %v587_v26 = vmul.f32 %v1060_v47, %v1060_v47 }
 0x11d   :  { %v614_v10 = vadd.f32 %v613_v6, %v583_v4  ;;  %v545_v11 = vadd.f32 %v1040_v30, %v544_v5  ;;  %v588_v30 = vmul.f32 %v1064_v54, %v1064_v54 }
 0x11f   :  { %v546_v12 = vadd.f32 %v545_v11, %v1062_v49  ;;  %v615_v13 = vadd.f32 %v614_v10, %v584_v8  ;;  %v589_v49 = vmul.f32 %v1086_v9, %v1086_v9 }
 0x121   :  { %v616_v15 = vadd.f32 %v615_v13, %v585_v28  ;;  %v547_v35 = vadd.f32 %v546_v12, %v1068_v58 }
 0x123   :  { %v548_v17 = vadd.f32 %v1060_v47, %v547_v35  ;;  %v617_v19 = vadd.f32 %v616_v15, %v586_v16  ;;  %v591_v47 = vmul.f32 %v1084_v7, %v1084_v7 }
 0x125   :  { %v618_v20 = vadd.f32 %v617_v19, %v587_v26  ;;  %v549_v21 = vadd.f32 %v1064_v54, %v548_v17  ;;  %v592_v54 = vmul.f32 %v1088_v14, %v1088_v14 }
 0x127   :  { %v550_v22 = vadd.f32 %v549_v21, %v1086_v9  ;;  %v619_v23 = vadd.f32 %v618_v20, %v588_v30  ;;  %v593_v9 = vmul.f32 %v352_v37, %v352_v37 }
 0x129   :  { %v620_v24 = vadd.f32 %v619_v23, %v589_v49  ;;  %v551_v58 = vadd.f32 %v550_v22, %v1092_v18  ;;  %v595_v18 = vmul.f32 %v1108_v34, %v1108_v34 }
 0x12b   :  { %v552_v27 = vadd.f32 %v1084_v7, %v551_v58  ;;  %v621_v29 = vadd.f32 %v620_v24, %v590_v25  ;;  %v596_v7 = vmul.f32 %v1110_v42, %v1110_v42 }
 0x12d   :  { %v622_v31 = vadd.f32 %v621_v29, %v591_v47  ;;  %v553_v32 = vadd.f32 %v1088_v14, %v552_v27 }
 0x12f   :  { %v554_v33 = vadd.f32 %v553_v32, %v352_v37  ;;  %v623_v36 = vadd.f32 %v622_v31, %v592_v54 }
 0x131   :  { %v624_v38 = vadd.f32 %v623_v36, %v593_v9  ;;  %v555_v39 = vadd.f32 %v554_v33, %v355_v46 }
 0x133   :  { %v556_v41 = vadd.f32 %v1108_v34, %v555_v39  ;;  %v625_v43 = vadd.f32 %v624_v38, %v594_v40 }
 0x135   :  { %v557_v44 = vadd.f32 %v1110_v42, %v556_v41  ;;  %v626_v45 = vadd.f32 %v625_v43, %v595_v18 }
 0x137   :  { %v558_v48 = vrot.slane %v557_v44, 4  ;;  %v627_v14 = vadd.f32 %v626_v45, %v596_v7 }
 0x139   :  { %v559_v50 = vadd.f32 %v558_v48, %v557_v44  ;;  %v628_v37 = vrot.slane %v627_v14, 4 }
 0x13b   :  { %v560_v51 = vrot.slane %v559_v50, 2  ;;  %v629_v52 = vadd.f32 %v628_v37, %v627_v14 }
 0x13d   :  { %v561_v53 = vadd.f32 %v560_v51, %v559_v50  ;;  %v630_v46 = vrot.slane %v629_v52, 2 }
 0x13f   :  { %v562_v55 = vrot.slane %v561_v53, 1  ;;  %v631_v56 = vadd.f32 %v630_v46, %v629_v52 }
 0x141   :  { %v563_v57 = vadd.f32 %v562_v55, %v561_v53  ;;  %v632_v59 = vrot.slane %v631_v56, 1 }
 0x143   :  { %564 = vst [vmem:[%s1176_s3] sm:$0x1] %v563_v57  ;;  %v633_v34 = vadd.f32 %v632_v59, %v631_v56 }
 0x145   :  { %634 = vst [vmem:[%s1176_s3 + $0x1] sm:$0x1] %v633_v34 }

// kernel: basic_block_forward.9
= control target key start
LH: loop header
LB: loop body
LE: loop exit
PB: predicated region body
PF: predicated region fallthrough
CT: control target
= control target key end

     0   :  { %s944_s0 = inlined_call_operand.vmem [shape: bf16[256,128], index: 0, kind: input, shape index: {}]   ;;  %s945_s1 = inlined_call_operand.vmem [shape: bf16[256,128], index: 1, kind: input, shape index: {}]   ;;  %s946_s2 = inlined_call_operand.vmem [shape: f32[1,128], index: 2, kind: input, shape index: {}]   ;;  %s947_s3 = inlined_call_operand.vmem [shape: f32[1,128], index: 3, kind: input, shape index: {}]   ;;  %s948_s4 = inlined_call_operand.vmem [shape: f32[1,128], index: 4, kind: input, shape index: {}]   ;;  %s949_s5 = inlined_call_operand.vmem [shape: f32[1,128], index: 5, kind: input, shape index: {}]   ;;  %s950_s6 = inlined_call_operand.vmem [shape: f32[256,128], index: 6, kind: output, shape index: {}]  }
   0x1   :  { %v412_v0 = vld [vmem:[%s944_s0] sm:$0xff]   ;;  %v539_v9 = vld [vmem:[%s944_s0 + $0x8] sm:$0xff]   ;;  %v540_v20 = vld [vmem:[%s944_s0 + $0x10] sm:$0xff]  }
   0x2   :  { %v610_v1 = vld [vmem:[%s946_s2] ss:$0 sm:$0xff]  ;;  %v413_v2 = vunpack.c.l.bf16 %v412_v0  ;;  %v414_v5 = vunpack.c.h.bf16 %v412_v0  ;;  %v554_v10 = vld [vmem:[%s945_s1 + $0x8] sm:$0xff]   ;;  %v417_v14 = vunpack.c.l.bf16 %v539_v9  ;;  %v418_v18 = vunpack.c.h.bf16 %v539_v9  ;;  %v555_v21 = vld [vmem:[%s945_s1 + $0x10] sm:$0xff]  }
   0x3   :  { %v476_v3 = vld [vmem:[%s945_s1] sm:$0xff]   ;;  %v481_v15 = vunpack.c.l.bf16 %v554_v10  ;;  %v482_v19 = vunpack.c.h.bf16 %v554_v10  ;;  %v421_v32 = vunpack.c.l.bf16 %v540_v20  ;;  %v485_v33 = vunpack.c.l.bf16 %v555_v21  ;;  %v541_v42 = vld [vmem:[%s944_s0 + $0x18] sm:$0xff]  }
   0x4   :  { %v618_v4 = vld [vmem:[%s948_s4] ss:$0 sm:$0xff]  ;;  %v477_v7 = vunpack.c.l.bf16 %v476_v3  ;;  %v478_v8 = vunpack.c.h.bf16 %v476_v3  ;;  %v94_v11 = vmul.f32 %v413_v2, %v610_v1  ;;  %v95_v13 = vmul.f32 %v414_v5, %v610_v1  ;;  %v556_v43 = vld [vmem:[%s945_s1 + $0x18] sm:$0xff]  }
   0x5   :  { %v623_v6 = vld [vmem:[%s947_s3] ss:$0 sm:$0xff]  ;;  %v96_v24 = vmul.f32 %v417_v14, %v610_v1  ;;  %v238_v25 = vmul.f32 %v481_v15, %v618_v4  ;;  %v97_v28 = vmul.f32 %v418_v18, %v610_v1  ;;  %v239_v29 = vmul.f32 %v482_v19, %v618_v4  ;;  %v543_v14 = vld [vmem:[%s944_s0 + $0x28] sm:$0xff]  }
   0x6   :  { %v635_v12 = vld [vmem:[%s949_s5] ss:$0 sm:$0xff]  ;;  %v236_v16 = vmul.f32 %v477_v7, %v618_v4  ;;  %v237_v17 = vmul.f32 %v478_v8, %v618_v4  ;;  %v133_v22 = vadd.f32 %v623_v6, %v94_v11  ;;  %v134_v23 = vadd.f32 %v623_v6, %v95_v13  ;;  %v558_v19 = vld [vmem:[%s945_s1 + $0x28] sm:$0xff]  }
   0x7   :  { %v135_v30 = vadd.f32 %v623_v6, %v96_v24  ;;  %v277_v31 = vadd.f32 %v635_v12, %v238_v25  ;;  %v136_v36 = vadd.f32 %v623_v6, %v97_v28  ;;  %v278_v37 = vadd.f32 %v635_v12, %v239_v29  ;;  %v542_v52 = vld [vmem:[%s944_s0 + $0x20] sm:$0xff]  }
   0x8   :  { %v275_v26 = vadd.f32 %v635_v12, %v236_v16  ;;  %v276_v27 = vadd.f32 %v635_v12, %v237_v17  ;;  %v98_v39 = vmul.f32 %v421_v32, %v610_v1  ;;  %v240_v40 = vmul.f32 %v485_v33, %v618_v4  ;;  %v557_v57 = vld [vmem:[%s945_s1 + $0x20] sm:$0xff]   ;;  %v544_v32 = vld [vmem:[%s944_s0 + $0x30] sm:$0xff]  }
   0x9   :  { %v309_v38 = vadd.f32 %v277_v31, %v135_v30  ;;  %v422_v41 = vunpack.c.h.bf16 %v540_v20  ;;  %v310_v46 = vadd.f32 %v278_v37, %v136_v36  ;;  %v486_v47 = vunpack.c.h.bf16 %v555_v21  ;;  %v559_v33 = vld [vmem:[%s945_s1 + $0x30] sm:$0xff]  }
   0xa   :  { %v307_v34 = vadd.f32 %v275_v26, %v133_v22  ;;  %v308_v35 = vadd.f32 %v276_v27, %v134_v23  ;;  %v137_v49 = vadd.f32 %v623_v6, %v98_v39  ;;  %v279_v50 = vadd.f32 %v635_v12, %v240_v40 }
   0xb   :  { %v341_v48 = vmax.f32 %v309_v38, 0.0  ;;  %v99_v51 = vmul.f32 %v422_v41, %v610_v1  ;;  %v342_v53 = vmax.f32 %v310_v46, 0.0  ;;  %v241_v54 = vmul.f32 %v486_v47, %v618_v4  ;;  %v545_v46 = vld [vmem:[%s944_s0 + $0x38] sm:$0xff]  }
   0xc   :  { %v339_v44 = vmax.f32 %v307_v34, 0.0  ;;  %v340_v45 = vmax.f32 %v308_v35, 0.0  ;;  %v425_v55 = vunpack.c.l.bf16 %v541_v42  ;;  %v489_v56 = vunpack.c.l.bf16 %v556_v43 }
   0xd   :  { %373 = vst [vmem:[%s950_s6 + $0x10] sm:$0xff] %v341_v48  ;;  %v311_v58 = vadd.f32 %v279_v50, %v137_v49  ;;  %v138_v59 = vadd.f32 %v623_v6, %v99_v51  ;;  %v426_v60 = vunpack.c.h.bf16 %v541_v42  ;;  %v490_v61 = vunpack.c.h.bf16 %v556_v43  ;;  %374 = vst [vmem:[%s950_s6 + $0x18] sm:$0xff] %v342_v53 }
   0xe   :  { %371 = vst [vmem:[%s950_s6] sm:$0xff] %v339_v44  ;;  %372 = vst [vmem:[%s950_s6 + $0x8] sm:$0xff] %v340_v45  ;;  %v280_v62 = vadd.f32 %v635_v12, %v241_v54  ;;  %v100_v63 = vmul.f32 %v425_v55, %v610_v1  ;;  %v242_v0 = vmul.f32 %v489_v56, %v618_v4  ;;  %v429_v2 = vunpack.c.l.bf16 %v542_v52  ;;  %v560_v55 = vld [vmem:[%s945_s1 + $0x38] sm:$0xff]  }
   0xf   :  { %v343_v3 = vmax.f32 %v311_v58, 0.0  ;;  %v101_v5 = vmul.f32 %v426_v60, %v610_v1  ;;  %v243_v7 = vmul.f32 %v490_v61, %v618_v4  ;;  %v493_v8 = vunpack.c.l.bf16 %v557_v57 }
  0x10   :  { %v312_v9 = vadd.f32 %v280_v62, %v138_v59  ;;  %v139_v10 = vadd.f32 %v623_v6, %v100_v63  ;;  %v281_v11 = vadd.f32 %v635_v12, %v242_v0  ;;  %v102_v13 = vmul.f32 %v429_v2, %v610_v1 }
  0x11   :  { %375 = vst [vmem:[%s950_s6 + $0x20] sm:$0xff] %v343_v3  ;;  %v140_v15 = vadd.f32 %v623_v6, %v101_v5  ;;  %v282_v16 = vadd.f32 %v635_v12, %v243_v7  ;;  %v244_v17 = vmul.f32 %v493_v8, %v618_v4  ;;  %v430_v18 = vunpack.c.h.bf16 %v542_v52  ;;  %v546_v7 = vld [vmem:[%s944_s0 + $0x40] sm:$0xff]  }
  0x12   :  { %v344_v20 = vmax.f32 %v312_v9, 0.0  ;;  %v313_v21 = vadd.f32 %v281_v11, %v139_v10  ;;  %v141_v22 = vadd.f32 %v623_v6, %v102_v13  ;;  %v494_v23 = vunpack.c.h.bf16 %v557_v57  ;;  %v561_v13 = vld [vmem:[%s945_s1 + $0x40] sm:$0xff]  }
  0x13   :  { %v314_v24 = vadd.f32 %v282_v16, %v140_v15  ;;  %v283_v25 = vadd.f32 %v635_v12, %v244_v17  ;;  %v103_v26 = vmul.f32 %v430_v18, %v610_v1  ;;  %v433_v27 = vunpack.c.l.bf16 %v543_v14 }
  0x14   :  { %376 = vst [vmem:[%s950_s6 + $0x28] sm:$0xff] %v344_v20  ;;  %v345_v28 = vmax.f32 %v313_v21, 0.0  ;;  %v245_v29 = vmul.f32 %v494_v23, %v618_v4  ;;  %v497_v30 = vunpack.c.l.bf16 %v558_v19  ;;  %v434_v31 = vunpack.c.h.bf16 %v543_v14 }
  0x15   :  { %v346_v34 = vmax.f32 %v314_v24, 0.0  ;;  %v315_v35 = vadd.f32 %v283_v25, %v141_v22  ;;  %v142_v36 = vadd.f32 %v623_v6, %v103_v26  ;;  %v104_v37 = vmul.f32 %v433_v27, %v610_v1  ;;  %v547_v26 = vld [vmem:[%s944_s0 + $0x48] sm:$0xff]  }
  0x16   :  { %377 = vst [vmem:[%s950_s6 + $0x30] sm:$0xff] %v345_v28  ;;  %v284_v38 = vadd.f32 %v635_v12, %v245_v29  ;;  %v246_v39 = vmul.f32 %v497_v30, %v618_v4  ;;  %v105_v40 = vmul.f32 %v434_v31, %v610_v1  ;;  %v498_v41 = vunpack.c.h.bf16 %v558_v19  ;;  %v562_v27 = vld [vmem:[%s945_s1 + $0x48] sm:$0xff]  }
  0x17   :  { %378 = vst [vmem:[%s950_s6 + $0x38] sm:$0xff] %v346_v34  ;;  %v347_v42 = vmax.f32 %v315_v35, 0.0  ;;  %v143_v43 = vadd.f32 %v623_v6, %v104_v37  ;;  %v437_v44 = vunpack.c.l.bf16 %v544_v32  ;;  %v501_v45 = vunpack.c.l.bf16 %v559_v33 }
  0x18   :  { %v316_v47 = vadd.f32 %v284_v38, %v142_v36  ;;  %v285_v48 = vadd.f32 %v635_v12, %v246_v39  ;;  %v144_v49 = vadd.f32 %v623_v6, %v105_v40  ;;  %v247_v50 = vmul.f32 %v498_v41, %v618_v4  ;;  %v548_v40 = vld [vmem:[%s944_s0 + $0x50] sm:$0xff]  }
  0x19   :  { %379 = vst [vmem:[%s950_s6 + $0x40] sm:$0xff] %v347_v42  ;;  %v106_v51 = vmul.f32 %v437_v44, %v610_v1  ;;  %v248_v52 = vmul.f32 %v501_v45, %v618_v4  ;;  %v438_v53 = vunpack.c.h.bf16 %v544_v32  ;;  %v502_v54 = vunpack.c.h.bf16 %v559_v33 }
  0x1a   :  { %v348_v56 = vmax.f32 %v316_v47, 0.0  ;;  %v317_v57 = vadd.f32 %v285_v48, %v143_v43  ;;  %v286_v58 = vadd.f32 %v635_v12, %v247_v50  ;;  %v441_v59 = vunpack.c.l.bf16 %v545_v46 }
  0x1b   :  { %v145_v60 = vadd.f32 %v623_v6, %v106_v51  ;;  %v287_v61 = vadd.f32 %v635_v12, %v248_v52  ;;  %v107_v62 = vmul.f32 %v438_v53, %v610_v1  ;;  %v249_v63 = vmul.f32 %v502_v54, %v618_v4 }
  0x1c   :  { %380 = vst [vmem:[%s950_s6 + $0x48] sm:$0xff] %v348_v56  ;;  %v349_v0 = vmax.f32 %v317_v57, 0.0  ;;  %v318_v2 = vadd.f32 %v286_v58, %v144_v49  ;;  %v108_v3 = vmul.f32 %v441_v59, %v610_v1  ;;  %v505_v5 = vunpack.c.l.bf16 %v560_v55  ;;  %v563_v49 = vld [vmem:[%s945_s1 + $0x50] sm:$0xff]  }
  0x1d   :  { %v319_v8 = vadd.f32 %v287_v61, %v145_v60  ;;  %v146_v9 = vadd.f32 %v623_v6, %v107_v62  ;;  %v288_v10 = vadd.f32 %v635_v12, %v249_v63  ;;  %v442_v11 = vunpack.c.h.bf16 %v545_v46  ;;  %v549_v62 = vld [vmem:[%s944_s0 + $0x58] sm:$0xff]  }
  0x1e   :  { %381 = vst [vmem:[%s950_s6 + $0x50] sm:$0xff] %v349_v0  ;;  %v350_v14 = vmax.f32 %v318_v2, 0.0  ;;  %v147_v15 = vadd.f32 %v623_v6, %v108_v3  ;;  %v250_v16 = vmul.f32 %v505_v5, %v618_v4  ;;  %v506_v17 = vunpack.c.h.bf16 %v560_v55  ;;  %v564_v63 = vld [vmem:[%s945_s1 + $0x58] sm:$0xff]  }
  0x1f   :  { %v351_v18 = vmax.f32 %v319_v8, 0.0  ;;  %v320_v19 = vadd.f32 %v288_v10, %v146_v9  ;;  %v109_v20 = vmul.f32 %v442_v11, %v610_v1  ;;  %v445_v21 = vunpack.c.l.bf16 %v546_v7 }
  0x20   :  { %382 = vst [vmem:[%s950_s6 + $0x58] sm:$0xff] %v350_v14  ;;  %v289_v22 = vadd.f32 %v635_v12, %v250_v16  ;;  %v251_v23 = vmul.f32 %v506_v17, %v618_v4  ;;  %v509_v24 = vunpack.c.l.bf16 %v561_v13  ;;  %v446_v25 = vunpack.c.h.bf16 %v546_v7 }
  0x21   :  { %383 = vst [vmem:[%s950_s6 + $0x60] sm:$0xff] %v351_v18  ;;  %v352_v28 = vmax.f32 %v320_v19, 0.0  ;;  %v148_v29 = vadd.f32 %v623_v6, %v109_v20  ;;  %v110_v30 = vmul.f32 %v445_v21, %v610_v1  ;;  %v510_v31 = vunpack.c.h.bf16 %v561_v13  ;;  %v550_v20 = vld [vmem:[%s944_s0 + $0x60] sm:$0xff]  }
  0x22   :  { %v321_v32 = vadd.f32 %v289_v22, %v147_v15  ;;  %v290_v33 = vadd.f32 %v635_v12, %v251_v23  ;;  %v252_v34 = vmul.f32 %v509_v24, %v618_v4  ;;  %v111_v35 = vmul.f32 %v446_v25, %v610_v1  ;;  %v565_v25 = vld [vmem:[%s945_s1 + $0x60] sm:$0xff]  }
  0x23   :  { %384 = vst [vmem:[%s950_s6 + $0x68] sm:$0xff] %v352_v28  ;;  %v149_v36 = vadd.f32 %v623_v6, %v110_v30  ;;  %v253_v37 = vmul.f32 %v510_v31, %v618_v4  ;;  %v449_v38 = vunpack.c.l.bf16 %v547_v26  ;;  %v513_v39 = vunpack.c.l.bf16 %v562_v27 }
  0x24   :  { %v353_v41 = vmax.f32 %v321_v32, 0.0  ;;  %v322_v42 = vadd.f32 %v290_v33, %v148_v29  ;;  %v291_v43 = vadd.f32 %v635_v12, %v252_v34  ;;  %v150_v44 = vadd.f32 %v623_v6, %v111_v35  ;;  %v551_v34 = vld [vmem:[%s944_s0 + $0x68] sm:$0xff]  }
  0x25   :  { %v292_v45 = vadd.f32 %v635_v12, %v253_v37  ;;  %v112_v46 = vmul.f32 %v449_v38, %v610_v1  ;;  %v254_v47 = vmul.f32 %v513_v39, %v618_v4  ;;  %v450_v48 = vunpack.c.h.bf16 %v547_v26 }
  0x26   :  { %385 = vst [vmem:[%s950_s6 + $0x70] sm:$0xff] %v353_v41  ;;  %v354_v50 = vmax.f32 %v322_v42, 0.0  ;;  %v323_v51 = vadd.f32 %v291_v43, %v149_v36  ;;  %v514_v52 = vunpack.c.h.bf16 %v562_v27  ;;  %v453_v53 = vunpack.c.l.bf16 %v548_v40  ;;  %v566_v43 = vld [vmem:[%s945_s1 + $0x68] sm:$0xff]  }
  0x27   :  { %v324_v54 = vadd.f32 %v292_v45, %v150_v44  ;;  %v151_v55 = vadd.f32 %v623_v6, %v112_v46  ;;  %v293_v56 = vadd.f32 %v635_v12, %v254_v47  ;;  %v113_v57 = vmul.f32 %v450_v48, %v610_v1 }
  0x28   :  { %386 = vst [vmem:[%s950_s6 + $0x78] sm:$0xff] %v354_v50  ;;  %v355_v58 = vmax.f32 %v323_v51, 0.0  ;;  %v255_v59 = vmul.f32 %v514_v52, %v618_v4  ;;  %v114_v60 = vmul.f32 %v453_v53, %v610_v1  ;;  %v517_v61 = vunpack.c.l.bf16 %v563_v49 }
  0x29   :  { %v356_v0 = vmax.f32 %v324_v54, 0.0  ;;  %v325_v2 = vadd.f32 %v293_v56, %v151_v55  ;;  %v152_v3 = vadd.f32 %v623_v6, %v113_v57  ;;  %v454_v5 = vunpack.c.h.bf16 %v548_v40  ;;  %v552_v56 = vld [vmem:[%s944_s0 + $0x70] sm:$0xff]  }
  0x2a   :  { %387 = vst [vmem:[%s950_s6 + $0x80] sm:$0xff] %v355_v58  ;;  %v294_v7 = vadd.f32 %v635_v12, %v255_v59  ;;  %v153_v8 = vadd.f32 %v623_v6, %v114_v60  ;;  %v256_v9 = vmul.f32 %v517_v61, %v618_v4  ;;  %v518_v10 = vunpack.c.h.bf16 %v563_v49  ;;  %v567_v57 = vld [vmem:[%s945_s1 + $0x70] sm:$0xff]  }
  0x2b   :  { %388 = vst [vmem:[%s950_s6 + $0x88] sm:$0xff] %v356_v0  ;;  %v357_v11 = vmax.f32 %v325_v2, 0.0  ;;  %v115_v13 = vmul.f32 %v454_v5, %v610_v1  ;;  %v457_v14 = vunpack.c.l.bf16 %v549_v62  ;;  %v521_v15 = vunpack.c.l.bf16 %v564_v63 }
  0x2c   :  { %v326_v16 = vadd.f32 %v294_v7, %v152_v3  ;;  %v295_v17 = vadd.f32 %v635_v12, %v256_v9  ;;  %v257_v18 = vmul.f32 %v518_v10, %v618_v4  ;;  %v458_v19 = vunpack.c.h.bf16 %v549_v62 }
  0x2d   :  { %389 = vst [vmem:[%s950_s6 + $0x90] sm:$0xff] %v357_v11  ;;  %v154_v21 = vadd.f32 %v623_v6, %v115_v13  ;;  %v116_v22 = vmul.f32 %v457_v14, %v610_v1  ;;  %v258_v23 = vmul.f32 %v521_v15, %v618_v4  ;;  %v522_v24 = vunpack.c.h.bf16 %v564_v63  ;;  %v553_v14 = vld [vmem:[%s944_s0 + $0x78] sm:$0xff]  }
  0x2e   :  { %v358_v26 = vmax.f32 %v326_v16, 0.0  ;;  %v327_v27 = vadd.f32 %v295_v17, %v153_v8  ;;  %v296_v28 = vadd.f32 %v635_v12, %v257_v18  ;;  %v117_v29 = vmul.f32 %v458_v19, %v610_v1  ;;  %v568_v19 = vld [vmem:[%s945_s1 + $0x78] sm:$0xff]  }
  0x2f   :  { %v155_v30 = vadd.f32 %v623_v6, %v116_v22  ;;  %v297_v31 = vadd.f32 %v635_v12, %v258_v23  ;;  %v259_v32 = vmul.f32 %v522_v24, %v618_v4  ;;  %v461_v33 = vunpack.c.l.bf16 %v550_v20 }
  0x30   :  { %390 = vst [vmem:[%s950_s6 + $0x98] sm:$0xff] %v358_v26  ;;  %v359_v35 = vmax.f32 %v327_v27, 0.0  ;;  %v328_v36 = vadd.f32 %v296_v28, %v154_v21  ;;  %v156_v37 = vadd.f32 %v623_v6, %v117_v29  ;;  %v525_v38 = vunpack.c.l.bf16 %v565_v25 }
  0x31   :  { %v329_v39 = vadd.f32 %v297_v31, %v155_v30  ;;  %v298_v40 = vadd.f32 %v635_v12, %v259_v32  ;;  %v118_v41 = vmul.f32 %v461_v33, %v610_v1  ;;  %v462_v42 = vunpack.c.h.bf16 %v550_v20 }
  0x32   :  { %391 = vst [vmem:[%s950_s6 + $0xa0] sm:$0xff] %v359_v35  ;;  %v360_v44 = vmax.f32 %v328_v36, 0.0  ;;  %v260_v45 = vmul.f32 %v525_v38, %v618_v4  ;;  %v526_v46 = vunpack.c.h.bf16 %v565_v25  ;;  %v465_v47 = vunpack.c.l.bf16 %v551_v34 }
  0x33   :  { %v361_v48 = vmax.f32 %v329_v39, 0.0  ;;  %v330_v49 = vadd.f32 %v298_v40, %v156_v37  ;;  %v157_v50 = vadd.f32 %v623_v6, %v118_v41  ;;  %v119_v51 = vmul.f32 %v462_v42, %v610_v1 }
  0x34   :  { %392 = vst [vmem:[%s950_s6 + $0xa8] sm:$0xff] %v360_v44  ;;  %v299_v52 = vadd.f32 %v635_v12, %v260_v45  ;;  %v261_v53 = vmul.f32 %v526_v46, %v618_v4  ;;  %v120_v54 = vmul.f32 %v465_v47, %v610_v1  ;;  %v529_v55 = vunpack.c.l.bf16 %v566_v43 }
  0x35   :  { %393 = vst [vmem:[%s950_s6 + $0xb0] sm:$0xff] %v361_v48  ;;  %v362_v58 = vmax.f32 %v330_v49, 0.0  ;;  %v158_v59 = vadd.f32 %v623_v6, %v119_v51  ;;  %v466_v60 = vunpack.c.h.bf16 %v551_v34  ;;  %v530_v61 = vunpack.c.h.bf16 %v566_v43 }
  0x36   :  { %v331_v62 = vadd.f32 %v299_v52, %v157_v50  ;;  %v300_v63 = vadd.f32 %v635_v12, %v261_v53  ;;  %v159_v0 = vadd.f32 %v623_v6, %v120_v54  ;;  %v262_v2 = vmul.f32 %v529_v55, %v618_v4 }
  0x37   :  { %394 = vst [vmem:[%s950_s6 + $0xb8] sm:$0xff] %v362_v58  ;;  %v121_v3 = vmul.f32 %v466_v60, %v610_v1  ;;  %v263_v5 = vmul.f32 %v530_v61, %v618_v4  ;;  %v469_v7 = vunpack.c.l.bf16 %v552_v56  ;;  %v533_v8 = vunpack.c.l.bf16 %v567_v57 }
  0x38   :  { %v363_v9 = vmax.f32 %v331_v62, 0.0  ;;  %v332_v10 = vadd.f32 %v300_v63, %v158_v59  ;;  %v301_v11 = vadd.f32 %v635_v12, %v262_v2  ;;  %v470_v13 = vunpack.c.h.bf16 %v552_v56 }
  0x39   :  { %v160_v15 = vadd.f32 %v623_v6, %v121_v3  ;;  %v302_v16 = vadd.f32 %v635_v12, %v263_v5  ;;  %v122_v17 = vmul.f32 %v469_v7, %v610_v1  ;;  %v264_v18 = vmul.f32 %v533_v8, %v618_v4 }
  0x3a   :  { %395 = vst [vmem:[%s950_s6 + $0xc0] sm:$0xff] %v363_v9  ;;  %v364_v20 = vmax.f32 %v332_v10, 0.0  ;;  %v333_v21 = vadd.f32 %v301_v11, %v159_v0  ;;  %v123_v22 = vmul.f32 %v470_v13, %v610_v1  ;;  %v534_v23 = vunpack.c.h.bf16 %v567_v57 }
  0x3b   :  { %v334_v24 = vadd.f32 %v302_v16, %v160_v15  ;;  %v161_v25 = vadd.f32 %v623_v6, %v122_v17  ;;  %v303_v26 = vadd.f32 %v635_v12, %v264_v18  ;;  %v473_v27 = vunpack.c.l.bf16 %v553_v14 }
  0x3c   :  { %396 = vst [vmem:[%s950_s6 + $0xc8] sm:$0xff] %v364_v20  ;;  %v365_v28 = vmax.f32 %v333_v21, 0.0  ;;  %v162_v29 = vadd.f32 %v623_v6, %v123_v22  ;;  %v265_v30 = vmul.f32 %v534_v23, %v618_v4  ;;  %v537_v31 = vunpack.c.l.bf16 %v568_v19 }
  0x3d   :  { %v366_v32 = vmax.f32 %v334_v24, 0.0  ;;  %v335_v33 = vadd.f32 %v303_v26, %v161_v25  ;;  %v124_v34 = vmul.f32 %v473_v27, %v610_v1  ;;  %v474_v35 = vunpack.c.h.bf16 %v553_v14 }
  0x3e   :  { %397 = vst [vmem:[%s950_s6 + $0xd0] sm:$0xff] %v365_v28  ;;  %v304_v36 = vadd.f32 %v635_v12, %v265_v30  ;;  %v266_v37 = vmul.f32 %v537_v31, %v618_v4  ;;  %v538_v38 = vunpack.c.h.bf16 %v568_v19 }
  0x3f   :  { %398 = vst [vmem:[%s950_s6 + $0xd8] sm:$0xff] %v366_v32  ;;  %v367_v39 = vmax.f32 %v335_v33, 0.0  ;;  %v163_v40 = vadd.f32 %v623_v6, %v124_v34  ;;  %v125_v41 = vmul.f32 %v474_v35, %v610_v1 }
  0x40   :  { %v336_v42 = vadd.f32 %v304_v36, %v162_v29  ;;  %v305_v43 = vadd.f32 %v635_v12, %v266_v37  ;;  %v267_v44 = vmul.f32 %v538_v38, %v618_v4 }
  0x41   :  { %399 = vst [vmem:[%s950_s6 + $0xe0] sm:$0xff] %v367_v39  ;;  %v164_v45 = vadd.f32 %v623_v6, %v125_v41 }
  0x42   :  { %v368_v46 = vmax.f32 %v336_v42, 0.0  ;;  %v337_v47 = vadd.f32 %v305_v43, %v163_v40  ;;  %v306_v48 = vadd.f32 %v635_v12, %v267_v44 }
  0x44   :  { %400 = vst [vmem:[%s950_s6 + $0xe8] sm:$0xff] %v368_v46  ;;  %v369_v1 = vmax.f32 %v337_v47, 0.0  ;;  %v338_v49 = vadd.f32 %v306_v48, %v164_v45 }
  0x46   :  { %401 = vst [vmem:[%s950_s6 + $0xf0] sm:$0xff] %v369_v1  ;;  %v370_v4 = vmax.f32 %v338_v49, 0.0 }
  0x48   :  { %402 = vst [vmem:[%s950_s6 + $0xf8] sm:$0xff] %v370_v4 }

</bundles_post_ra>
